<compile_context>
chip_gen: v6e
topology: v6e:2x2x1
jax: 0.10.0
libtpu: 0.0.40
codegen_flags: <defaults>
</compile_context>

<pallas_src>
import jax
import jax.numpy as jnp
import numpy as np
from jax.experimental import pallas as pl
from jax.experimental.pallas import tpu as pltpu


def _make_kernel(K, LP, P, Wg, N):
    """Build the fused ESM_CNN forward kernel (all shapes static)."""

    def kernel(x_ref, w2_ref, cb_ref, wr_ref, br_ref, out_ref):
        x = x_ref[...]                                            # [TB, C, T]

        # --- im2col: K lane-shifted views, stacked along the contraction axis.
        #     x_unf[b, j*C + c, l] = x[b, c, l + j]
        x_unf = jnp.concatenate([x[:, :, j:j + LP] for j in range(K)],
                                axis=1)                           # [TB, K*C, LP]

        # --- all N boosted-channel convs in ONE batched MXU matmul.
        #     w2_ref is the conv weight pre-reshaped/broadcast to [TB, N, K*C].
        conv = jnp.einsum('bnq,bql->bnl', w2_ref[...], x_unf,
                          preferred_element_type=jnp.float32)     # [TB, N, LP]

        fm = jax.nn.sigmoid(conv + cb_ref[...])                   # bias [1, N, LP]

        # --- MaxPool1d(P, stride=P), floor mode: running max of P shifted
        #     slices (pure VPU).  g[b, n, t] = max_{p<P} fm[b, n, t + p].
        g = fm[:, :, 0:Wg]
        for p in range(1, P):
            g = jnp.maximum(g, fm[:, :, p:p + Wg])                # [TB, N, Wg]

        # --- lay the boosted channels out along the lane axis -> [TB, N*Wg].
        G = jnp.concatenate([g[:, n, :] for n in range(N)], axis=-1)

        # --- fused readout (single 2-D dot).  The every-P-th-column pooling
        #     subsample is folded into wr (zero rows elsewhere); biases presummed.
        out_ref[...] = (jnp.dot(G, wr_ref[...],
                                preferred_element_type=jnp.float32)
                        + br_ref[...])

    return kernel


def esm_cnn_forward(x, conv_w, conv_b, ho_w, ho_b, p_size):
    """
    x:       [B, C, T]   float32   (NCW, PyTorch Conv1d layout)
    conv_w:  [N, C, K]   float32   (one single-output-channel Conv1d per boosted channel)
    conv_b:  [N]         float32
    ho_w:    [N, H, F]   float32   (readout Linear weight, PyTorch [out, in] convention)
    ho_b:    [N, H]      float32
    returns: [B, H]      float32
    """
    B, C, T = x.shape
    N, _, K = conv_w.shape
    H = ho_w.shape[1]
    LP = T - K + 1                       # VALID conv output length
    F = LP // p_size                     # pooled feature length (floor mode)
    Wg = (F - 1) * p_size + 1            # running-max window count
    Q = C * K
    assert ho_w.shape == (N, H, F), (ho_w.shape, (N, H, F))

    TB = 8 if B % 8 == 0 else B          # batch tile (parallel grid axis)
    grid = (B // TB,)

    f32 = jnp.float32
    x = x.astype(f32)

    # Conv weights: w2[n, j*C + c] = conv_w[n, c, j]; pre-broadcast over batch tile.
    w2 = jnp.transpose(conv_w, (0, 2, 1)).reshape(N, Q).astype(f32)
    w2b = jnp.broadcast_to(w2[None], (TB, N, Q))
    # Conv bias, broadcast over conv-output length (added before sigmoid).
    cbb = jnp.broadcast_to(conv_b.astype(f32)[None, :, None], (1, N, LP))

    # Fused readout weight: pooled[b,n,f] = g[b,n,f*P], so fold the subsample
    # into the weight:  wr[n*Wg + t, h] = ho_w[n, h, t//P] if t % P == 0 else 0.
    sel = jnp.zeros((Wg, F), f32).at[jnp.arange(F) * p_size, jnp.arange(F)].set(1.0)
    ho_wT = jnp.transpose(ho_w, (0, 2, 1)).astype(f32)          # [N, F, H]
    wr = jnp.einsum('wf,nfh->nwh', sel, ho_wT).reshape(N * Wg, H)
    br = jnp.sum(ho_b.astype(f32), axis=0, keepdims=True)       # [1, H]

    kernel = _make_kernel(K, LP, p_size, Wg, N)
    return pl.pallas_call(
        kernel,
        out_shape=jax.ShapeDtypeStruct((B, H), f32),
        grid=grid,
        in_specs=[
            pl.BlockSpec((TB, C, T), lambda b: (b, 0, 0)),      # x (tiled over batch)
            pl.BlockSpec((TB, N, Q), lambda b: (0, 0, 0)),      # conv weights (resident)
            pl.BlockSpec((1, N, LP), lambda b: (0, 0, 0)),      # conv bias
            pl.BlockSpec((N * Wg, H), lambda b: (0, 0)),        # fused readout weight
            pl.BlockSpec((1, H), lambda b: (0, 0)),             # summed readout bias
        ],
        out_specs=pl.BlockSpec((TB, H), lambda b: (b, 0)),
        compiler_params=pltpu.CompilerParams(
            dimension_semantics=("parallel",)),
    )(x, w2b, cbb, wr, br)


def reference_forward(x, conv_w, conv_b, ho_w, ho_b, p_size):
    """Pure-JAX reference of the PyTorch forward pass."""
    B, C, T = x.shape
    N, _, K = conv_w.shape
    H = ho_w.shape[1]
    LP = T - K + 1
    F = LP // p_size
    out = jnp.zeros((B, H), jnp.float32)
    for i in range(N):
        conv = jax.lax.conv_general_dilated(
            x, conv_w[i:i + 1], window_strides=(1,), padding='VALID',
            dimension_numbers=('NCH', 'OIH', 'NCH'))[:, 0, :] + conv_b[i]
        fm = jax.nn.sigmoid(conv)
        pooled = jnp.max(fm[:, :F * p_size].reshape(B, F, p_size), axis=-1)
        out = out + pooled @ ho_w[i].T + ho_b[i]
    return out


if __name__ == "__main__":
    key = jax.random.PRNGKey(0)

    # Small synthetic config implied by the module's __init__:
    B = 16                   # batch (2 parallel grid steps of 8)
    input_dim = 4            # opts.input_dim (Conv1d in-channels)
    lag_order = 19           # opts.lag_order
    T = lag_order - input_dim + 1   # Time_steps = 16
    H = 2                    # opts.H (Output_dim)
    channel_size = 3         # boosted channels used in forward (conv_idx + 1)
    K = 4                    # kernel size (e.g. ceil(Time_steps / 4))
    p_size = 3               # pool size
    hw_lambda = 0.5
    LP = T - K + 1           # conv output length = 13
    F = LP // p_size         # pooled feature length = 4

    k1, k2, k3, k4, k5 = jax.random.split(key, 5)
    x = jax.random.normal(k1, (B, input_dim, T), jnp.float32)
    conv_w = jax.random.uniform(k2, (channel_size, input_dim, K), jnp.float32,
                                minval=-hw_lambda, maxval=hw_lambda)
    conv_b = jax.random.uniform(k3, (channel_size,), jnp.float32,
                                minval=-hw_lambda, maxval=hw_lambda)
    ho_w = 0.1 * jax.random.normal(k4, (channel_size, H, F), jnp.float32)
    ho_b = 0.1 * jax.random.normal(k5, (channel_size, H), jnp.float32)

    out = esm_cnn_forward(x, conv_w, conv_b, ho_w, ho_b, p_size)
    out = jax.block_until_ready(out)

    ref = reference_forward(x, conv_w, conv_b, ho_w, ho_b, p_size)
    np.testing.assert_allclose(np.asarray(out), np.asarray(ref), rtol=1e-5, atol=1e-5)

    print("KERNEL_OK")
</pallas_src>

<mosaic_0001>
module attributes {stable_mosaic.version = 11 : i64} {
  func.func @kernel(%arg0: i32, %arg1: memref<8x4x16xf32, #tpu.memory_space<vmem>>, %arg2: memref<8x3x16xf32, #tpu.memory_space<vmem>>, %arg3: memref<1x3x13xf32, #tpu.memory_space<vmem>>, %arg4: memref<30x2xf32, #tpu.memory_space<vmem>>, %arg5: memref<1x2xf32, #tpu.memory_space<vmem>>, %arg6: memref<8x2xf32, #tpu.memory_space<vmem>>) attributes {dimension_semantics = [#tpu.dimension_semantics<parallel>], iteration_bounds = array<i64: 2>, scalar_prefetch = 0 : i64, scratch_operands = 0 : i64, tpu.core_type = #tpu.core_type<tc>, window_params = [{transform_indices = @transform_0, window_bounds = array<i64: 8, 4, 16>}, {pipeline_mode = #tpu.pipeline_mode<synchronous>, transform_indices = @transform_1, window_bounds = array<i64: 8, 3, 16>}, {pipeline_mode = #tpu.pipeline_mode<synchronous>, transform_indices = @transform_2, window_bounds = array<i64: 1, 3, 13>}, {pipeline_mode = #tpu.pipeline_mode<synchronous>, transform_indices = @transform_3, window_bounds = array<i64: 30, 2>}, {pipeline_mode = #tpu.pipeline_mode<synchronous>, transform_indices = @transform_4, window_bounds = array<i64: 1, 2>}, {transform_indices = @transform_5, window_bounds = array<i64: 8, 2>}]} {
    %c0 = arith.constant 0 : index
    %c0_0 = arith.constant 0 : index
    %c0_1 = arith.constant 0 : index
    %0 = vector.load %arg1[%c0, %c0_0, %c0_1] : memref<8x4x16xf32, #tpu.memory_space<vmem>>, vector<8x4x16xf32>
    %1 = vector.extract_strided_slice %0 {offsets = [0, 0, 0], sizes = [8, 4, 13], strides = [1, 1, 1]} : vector<8x4x16xf32> to vector<8x4x13xf32>
    %2 = vector.extract_strided_slice %0 {offsets = [0, 0, 1], sizes = [8, 4, 13], strides = [1, 1, 1]} : vector<8x4x16xf32> to vector<8x4x13xf32>
    %3 = vector.extract_strided_slice %0 {offsets = [0, 0, 2], sizes = [8, 4, 13], strides = [1, 1, 1]} : vector<8x4x16xf32> to vector<8x4x13xf32>
    %4 = vector.extract_strided_slice %0 {offsets = [0, 0, 3], sizes = [8, 4, 13], strides = [1, 1, 1]} : vector<8x4x16xf32> to vector<8x4x13xf32>
    %5 = tpu.concatenate %1, %2, %3, %4 in 1 : vector<8x4x13xf32>, vector<8x4x13xf32>, vector<8x4x13xf32>, vector<8x4x13xf32> -> vector<8x16x13xf32>
    %c0_2 = arith.constant 0 : index
    %c0_3 = arith.constant 0 : index
    %c0_4 = arith.constant 0 : index
    %6 = vector.load %arg2[%c0_2, %c0_3, %c0_4] : memref<8x3x16xf32, #tpu.memory_space<vmem>>, vector<8x3x16xf32>
    "tpu.trace_start"() <{level = 10 : i32, message = "bnq,bql->bnl"}> : () -> ()
    %cst = arith.constant dense<0.000000e+00> : vector<8x3x13xf32>
    %7 = tpu.matmul %6, %5, %cst {dimension_numbers = #tpu.dot_dimension_numbers<[2], [1], [1], [2], [0, 0, 0, 1, 1, 2], [0], [0]>} : vector<8x3x16xf32>, vector<8x16x13xf32>, vector<8x3x13xf32> -> vector<8x3x13xf32>
    "tpu.trace_stop"() : () -> ()
    %c0_5 = arith.constant 0 : index
    %c0_6 = arith.constant 0 : index
    %c0_7 = arith.constant 0 : index
    %8 = vector.load %arg3[%c0_5, %c0_6, %c0_7] : memref<1x3x13xf32, #tpu.memory_space<vmem>>, vector<1x3x13xf32>
    %9 = vector.broadcast %8 : vector<1x3x13xf32> to vector<8x3x13xf32>
    %10 = arith.addf %7, %9 : vector<8x3x13xf32>
    %11 = arith.negf %10 : vector<8x3x13xf32>
    %12 = math.exp %11 : vector<8x3x13xf32>
    %cst_8 = arith.constant 1.000000e+00 : f32
    %13 = vector.broadcast %cst_8 : f32 to vector<8x3x13xf32>
    %14 = arith.addf %13, %12 : vector<8x3x13xf32>
    %15 = arith.divf %13, %14 : vector<8x3x13xf32>
    %16 = vector.extract_strided_slice %15 {offsets = [0, 0, 0], sizes = [8, 3, 10], strides = [1, 1, 1]} : vector<8x3x13xf32> to vector<8x3x10xf32>
    %17 = vector.extract_strided_slice %15 {offsets = [0, 0, 1], sizes = [8, 3, 10], strides = [1, 1, 1]} : vector<8x3x13xf32> to vector<8x3x10xf32>
    %18 = arith.maximumf %16, %17 : vector<8x3x10xf32>
    %19 = vector.extract_strided_slice %15 {offsets = [0, 0, 2], sizes = [8, 3, 10], strides = [1, 1, 1]} : vector<8x3x13xf32> to vector<8x3x10xf32>
    %20 = arith.maximumf %18, %19 : vector<8x3x10xf32>
    %21 = vector.extract_strided_slice %20 {offsets = [0, 0, 0], sizes = [8, 1, 10], strides = [1, 1, 1]} : vector<8x3x10xf32> to vector<8x1x10xf32>
    %22 = vector.shape_cast %21 : vector<8x1x10xf32> to vector<8x10xf32>
    %23 = vector.extract_strided_slice %20 {offsets = [0, 1, 0], sizes = [8, 1, 10], strides = [1, 1, 1]} : vector<8x3x10xf32> to vector<8x1x10xf32>
    %24 = vector.shape_cast %23 : vector<8x1x10xf32> to vector<8x10xf32>
    %25 = vector.extract_strided_slice %20 {offsets = [0, 2, 0], sizes = [8, 1, 10], strides = [1, 1, 1]} : vector<8x3x10xf32> to vector<8x1x10xf32>
    %26 = vector.shape_cast %25 : vector<8x1x10xf32> to vector<8x10xf32>
    %27 = tpu.concatenate %22, %24, %26 in 1 : vector<8x10xf32>, vector<8x10xf32>, vector<8x10xf32> -> vector<8x30xf32>
    %c0_9 = arith.constant 0 : index
    %c0_10 = arith.constant 0 : index
    %28 = vector.load %arg4[%c0_9, %c0_10] : memref<30x2xf32, #tpu.memory_space<vmem>>, vector<30x2xf32>
    %cst_11 = arith.constant dense<0.000000e+00> : vector<8x2xf32>
    %29 = tpu.matmul %27, %28, %cst_11 {dimension_numbers = #tpu.dot_dimension_numbers<[1], [0], [0], [1], [0, 0, 1, 1], [], []>} : vector<8x30xf32>, vector<30x2xf32>, vector<8x2xf32> -> vector<8x2xf32>
    %c0_12 = arith.constant 0 : index
    %c0_13 = arith.constant 0 : index
    %30 = vector.load %arg5[%c0_12, %c0_13] : memref<1x2xf32, #tpu.memory_space<vmem>>, vector<1x2xf32>
    %31 = vector.broadcast %30 : vector<1x2xf32> to vector<8x2xf32>
    %32 = arith.addf %29, %31 : vector<8x2xf32>
    %c0_14 = arith.constant 0 : index
    %c0_15 = arith.constant 0 : index
    %33 = vector.load %arg6[%c0_14, %c0_15] : memref<8x2xf32, #tpu.memory_space<vmem>>, vector<8x2xf32>
    tpu.vector_store %arg6[%c0_14, %c0_15], %32 {strides = array<i32>} : memref<8x2xf32, #tpu.memory_space<vmem>>, vector<8x2xf32>,
    return
  }
  func.func @transform_0(%arg0: i32) -> (i32, i32, i32) {
    %c0_i32 = arith.constant 0 : i32
    %c0_i32_0 = arith.constant 0 : i32
    %c0_i32_1 = arith.constant 0 : i32
    return %arg0, %c0_i32, %c0_i32_0 : i32, i32, i32
  }
  func.func @transform_1(%arg0: i32) -> (i32, i32, i32) {
    %c0_i32 = arith.constant 0 : i32
    %c0_i32_0 = arith.constant 0 : i32
    %c0_i32_1 = arith.constant 0 : i32
    %c0_i32_2 = arith.constant 0 : i32
    return %c0_i32, %c0_i32_0, %c0_i32_1 : i32, i32, i32
  }
  func.func @transform_2(%arg0: i32) -> (i32, i32, i32) {
    %c0_i32 = arith.constant 0 : i32
    %c0_i32_0 = arith.constant 0 : i32
    %c0_i32_1 = arith.constant 0 : i32
    %c0_i32_2 = arith.constant 0 : i32
    return %c0_i32, %c0_i32_0, %c0_i32_1 : i32, i32, i32
  }
  func.func @transform_3(%arg0: i32) -> (i32, i32) {
    %c0_i32 = arith.constant 0 : i32
    %c0_i32_0 = arith.constant 0 : i32
    %c0_i32_1 = arith.constant 0 : i32
    return %c0_i32, %c0_i32_0 : i32, i32
  }
  func.func @transform_4(%arg0: i32) -> (i32, i32) {
    %c0_i32 = arith.constant 0 : i32
    %c0_i32_0 = arith.constant 0 : i32
    %c0_i32_1 = arith.constant 0 : i32
    return %c0_i32, %c0_i32_0 : i32, i32
  }
  func.func @transform_5(%arg0: i32) -> (i32, i32) {
    %c0_i32 = arith.constant 0 : i32
    %c0_i32_0 = arith.constant 0 : i32
    return %arg0, %c0_i32 : i32, i32
  }
}

</mosaic_0001>

<bundles_post_ra>
// kernel: tpu_custom_call.1
= control target key start
LH: loop header
LB: loop body
LE: loop exit
PB: predicated region body
PF: predicated region fallthrough
CT: control target
= control target key end

     0   :  { %s1481_s18 = smov 0   ;;  %s1720_s0 = inlined_call_operand.vmem [shape: f32[16,4,16], index: 0, kind: input, shape index: {}]   ;;  %s1721_s1 = inlined_call_operand.vmem [shape: f32[8,3,16], index: 1, kind: input, shape index: {}]   ;;  %s1722_s2 = inlined_call_operand.vmem [shape: f32[1,3,13], index: 2, kind: input, shape index: {}]   ;;  %s1723_s3 = inlined_call_operand.vmem [shape: f32[30,2], index: 3, kind: input, shape index: {}]   ;;  %s1724_s4 = inlined_call_operand.vmem [shape: f32[1,2], index: 4, kind: input, shape index: {}]   ;;  %s1725_s5 = inlined_call_operand.vmem [shape: f32[16,2], index: 5, kind: output, shape index: {}]  }
   0x1 LB: > { %s1487_s19 = sadd.s32 4294967295, %s1442_s18   ;;  %p1268_p0 = scmp.ge.s32.totalorder %s1442_s18, 1  ;;  %s1442_s18 = sphi %s1481_s18, %s15_s18  }
   0x2   : > { %p188_p1 = scmp.lt.s32.totalorder %s1442_s18, 3 }
   0x4   : > { %p189_p2 = pnand %p1268_p0, %p188_p1 }
   0x5   : > { %s1269_s20 = sshll.u32 (!%p189_p2), %s1487_s19, 3  ;;  %s1446_s25 = smov (!%p189_p2), 126  }
   0x6   : > { %192 = sbr.rel (%p189_p2) target bundleno = 849 (0x351), region = 40  ;;  %p216_p3 = scmp.lt.s32.totalorder (!%p189_p2), %s1269_s20, 15 }
   0x7   : > { %s1447_s26 = smov (!%p189_p2), 127   ;;  %s1448_s27 = smov (!%p189_p2), 125  }
   0x8   : > { %s1449_s6 = smov (!%p189_p2), 20   ;;  %s1450_s7 = smov (!%p189_p2), 10  }
   0x9   : > { %p221_p4 = scmp.lt.s32.totalorder (!%p189_p2), %s1487_s19, 1 }
   0xb   : > { %v1444_v0 = vmov 0.0   ;;  %vm1445_vm0 = vmmov 0   ;;  %s1727_s20 = smov (!%p216_p3, %s1269_s20), 15  ;;  %vm321_vm1 = vcmask 1043456   ;;  %v338_v23 = vld [vmem:[%s1721_s1] sm:$0x7] }
   0xc   : > { %1322 = vmatprep.subr.mxu1 %v1444_v0  ;;  %1336 = vmatprep.subr.mxu0 %v1444_v0  ;;  %s1270_s21 = sshll.u32 %s1727_s20, 2  ;;  %vm347_vm2 = vcmask 130048   ;;  %v339_v28 = vld [vmem:[%s1721_s1 + $0x4] sm:$0x7]  ;;  %v340_v37 = vld [vmem:[%s1721_s1 + $0x8] sm:$0x7] }
   0xd   : > { %1326 = vmatprep.mubr.msk.f32.mxu1 %vm1445_vm0, %v1444_v0  ;;  %1340 = vmatprep.mubr.msk.f32.mxu0 %vm1445_vm0, %v1444_v0  ;;  %s1501_s24 = scalar_lea.vmem %s1720_s0, %s1270_s21  ;;  %v341_v40 = vld [vmem:[%s1721_s1 + $0xc] sm:$0x7]  ;;  %v342_v49 = vld [vmem:[%s1721_s1 + $0x10] sm:$0x7]  ;;  %v343_v52 = vld [vmem:[%s1721_s1 + $0x14] sm:$0x7] }
   0xe   : > { %v226_v1 = vld [vmem:[%s1501_s24 + $0x4] sm:$0xf]  ;;  %v225_v2 = vld [vmem:[%s1501_s24] sm:$0xf]  ;;  %v1510_v5 = vld [vmem:[%s1501_s24 + $0x8] sm:$0xf] }
   0xf   : > { %275 = vrot.lane.b32.xlu1 %v226_v1, %s1446_s25  ;;  %273 = vrot.lane.b32.xlu0 %v225_v2, %s1446_s25  ;;  %v241_v3 = vrot.slane %v225_v2, 4  ;;  %v242_v4 = vrot.slane %v226_v1, 4  ;;  %v243_v6 = vrot.slane %v1510_v5, 4  ;;  %v1516_v7 = vld [vmem:[%s1501_s24 + $0xc] sm:$0xf]  ;;  %vm1135_vm3 = vcmask 1045504  }
  0x10   : > { %v244_v8 = vrot.slane %v1516_v7, 4  ;;  %v1526_v9 = vld [vmem:[%s1501_s24 + $0x10] sm:$0xf]  ;;  %v1532_v11 = vld [vmem:[%s1501_s24 + $0x14] sm:$0xf]  ;;  %vm1061_vm4 = vcmask 1041409  }
  0x11   : > { %v245_v10 = vrot.slane %v1526_v9, 4  ;;  %v246_v12 = vrot.slane %v1532_v11, 4  ;;  %v1542_v13 = vld [vmem:[%s1501_s24 + $0x18] sm:$0xf]  ;;  %v1548_v15 = vld [vmem:[%s1501_s24 + $0x1c] sm:$0xf] }
  0x12   : > { %v247_v14 = vrot.slane %v1542_v13, 4  ;;  %v248_v16 = vrot.slane %v1548_v15, 4  ;;  %v344_v60 = vld [vmem:[%s1721_s1 + $0x18] sm:$0x7]  ;;  %v345_v62 = vld [vmem:[%s1721_s1 + $0x1c] sm:$0x7] }
  0x13   : > { %249 = vrot.lane.b32.xlu1 %v241_v3, %s1447_s26  ;;  %297 = vrot.lane.b32.xlu0 %v241_v3, %s1448_s27  ;;  %vm1064_vm5 = vcmask 1042434   ;;  %vm1067_vm6 = vcmask 1043459   ;;  %vm1070_vm7 = vcmask 1044484   ;;  %vm1073_vm8 = vcmask 1045509   ;;  %s1729_s19 = smov (!%p221_p4, %s1487_s19), 1 }
  0x14   : > { %vm1076_vm9 = vcmask 1046534   ;;  %vm1079_vm10 = vcmask 1047559   ;;  %vm1116_vm11 = vcmask 80896   ;;  %vm1118_vm12 = vcmask 162816   ;;  %s1271_s8 = sshll.u32 %s1729_s19, 3 }
  0x15   : > { %vm1131_vm13 = vcmask 244736   ;;  %s224_s13 = scalar_lea.vmem %s1725_s5, %s1271_s8  ;;  %vm1209_vm14 = vcmask 15360  }
  0x17   : > { %251 = vrot.lane.b32.xlu1 %v242_v4, %s1447_s26  ;;  %299 = vrot.lane.b32.xlu0 %v242_v4, %s1448_s27 }
  0x1b   : > { %301 = vrot.lane.b32.xlu1 %v243_v6, %s1448_s27  ;;  %277 = vrot.lane.b32.xlu0 %v1510_v5, %s1446_s25 }
  0x1f   : > { %303 = vrot.lane.b32.xlu1 %v244_v8, %s1448_s27  ;;  %279 = vrot.lane.b32.xlu0 %v1516_v7, %s1446_s25 }
  0x23   : > { %255 = vrot.lane.b32.xlu1 %v244_v8, %s1447_s26  ;;  %253 = vrot.lane.b32.xlu0 %v243_v6, %s1447_s26 }
  0x27   : > { %305 = vrot.lane.b32.xlu1 %v245_v10, %s1448_s27  ;;  %281 = vrot.lane.b32.xlu0 %v1526_v9, %s1446_s25 }
  0x2b   : > { %307 = vrot.lane.b32.xlu1 %v246_v12, %s1448_s27  ;;  %283 = vrot.lane.b32.xlu0 %v1532_v11, %s1446_s25 }
  0x2f   : > { %259 = vrot.lane.b32.xlu1 %v246_v12, %s1447_s26  ;;  %257 = vrot.lane.b32.xlu0 %v245_v10, %s1447_s26 }
  0x33   : > { %309 = vrot.lane.b32.xlu1 %v247_v14, %s1448_s27  ;;  %285 = vrot.lane.b32.xlu0 %v1542_v13, %s1446_s25 }
  0x37   : > { %311 = vrot.lane.b32.xlu1 %v248_v16, %s1448_s27  ;;  %287 = vrot.lane.b32.xlu0 %v1548_v15, %s1446_s25 }
  0x3b   : > { %261 = vrot.lane.b32.xlu0 %v247_v14, %s1447_s26  ;;  %263 = vrot.lane.b32.xlu1 %v248_v16, %s1447_s26 }
  0x81   : > { %v276_v17 = vpop.permute.xlu1 %275  ;;  %v274_v18 = vpop.permute.xlu0 %273 }
  0x85   : > { %v250_v19 = vpop.permute.xlu1 %249  ;;  %v298_v20 = vpop.permute.xlu0 %297 }
  0x86   : > { %v330_v21 = vsel %vm321_vm1, %v274_v18, %v298_v20  ;;  %v322_v22 = vsel %vm321_vm1, %v225_v2, %v250_v19  ;;  %v346_v2 = vld [vmem:[%s1722_s2] sm:$0x7] }
  0x87   : > { %1323 = vmatpush3.msra.mxu1 %v330_v21 }
  0x88   : > { %1324 = vmatprep.subr.mxu1 %v1444_v0 }
  0x89   : > { %v252_v24 = vpop.permute.xlu1 %251  ;;  %1325 = vmatpush3.msra.mxu1 %v322_v22  ;;  %v300_v25 = vpop.permute.xlu0 %299 }
  0x8a   : > { %v323_v26 = vsel %vm321_vm1, %v226_v1, %v252_v24  ;;  %v331_v27 = vsel %vm321_vm1, %v276_v17, %v300_v25  ;;  %1327 = vmatmul.mubr.msk.f32.vlgmr.msra.gmra.mxu1 %vm347_vm2, %v338_v23  ;;  %1329 = vmatprep.subr.mxu1 %v1444_v0 }
  0x8b   : > { %1330 = vmatpush3.msra.mxu1 %v331_v27  ;;  %1333 = vmatprep.mubr.msk.f32.mxu1 %vm1445_vm0, %v1444_v0 }
  0x8c   : > { %1331 = vmatprep.subr.mxu1 %v1444_v0 }
  0x8d   : > { %v302_v29 = vpop.permute.xlu1 %301  ;;  %v278_v30 = vpop.permute.xlu0 %277  ;;  %1332 = vmatpush3.msra.mxu1 %v323_v26 }
  0x8e   : > { %v332_v31 = vsel %vm321_vm1, %v278_v30, %v302_v29  ;;  %1343 = vmatprep.subr.mxu1 %v1444_v0  ;;  %1334 = vmatmul.mubr.msk.f32.vlgmr.msra.gmra.mxu1 %vm347_vm2, %v339_v28 }
  0x8f   : > { %1337 = vmatpush3.msra.mxu0 %v332_v31  ;;  %1347 = vmatprep.mubr.msk.f32.mxu1 %vm1445_vm0, %v1444_v0 }
  0x90   : > { %1338 = vmatprep.subr.mxu0 %v1444_v0 }
  0x91   : > { %v304_v32 = vpop.permute.xlu1 %303  ;;  %v280_v33 = vpop.permute.xlu0 %279 }
  0x92   : > { %v333_v34 = vsel %vm321_vm1, %v280_v33, %v304_v32 }
  0x93   : > { %1344 = vmatpush3.msra.mxu1 %v333_v34 }
  0x94   : > { %1345 = vmatprep.subr.mxu1 %v1444_v0 }
  0x95   : > { %v256_v35 = vpop.permute.xlu1 %255  ;;  %v254_v36 = vpop.permute.xlu0 %253 }
  0x96   : > { %v325_v38 = vsel %vm321_vm1, %v1516_v7, %v256_v35  ;;  %v324_v39 = vsel %vm321_vm1, %v1510_v5, %v254_v36 }
  0x97   : > { %1339 = vmatpush3.msra.mxu0 %v324_v39  ;;  %1346 = vmatpush3.msra.mxu1 %v325_v38 }
  0x98   : > { %1341 = vmatmul.mubr.msk.f32.vlgmr.msra.gmra.mxu0 %vm347_vm2, %v340_v37  ;;  %1350 = vmatprep.subr.mxu0 %v1444_v0 }
  0x99   : > { %v306_v41 = vpop.permute.xlu1 %305  ;;  %v282_v42 = vpop.permute.xlu0 %281  ;;  %1357 = vmatprep.subr.mxu1 %v1444_v0  ;;  %1348 = vmatmul.mubr.msk.f32.vlgmr.msra.gmra.mxu1 %vm347_vm2, %v341_v40 }
  0x9a   : > { %v334_v43 = vsel %vm321_vm1, %v282_v42, %v306_v41  ;;  %1354 = vmatprep.mubr.msk.f32.mxu0 %vm1445_vm0, %v1444_v0  ;;  %1361 = vmatprep.mubr.msk.f32.mxu1 %vm1445_vm0, %v1444_v0 }
  0x9b   : > { %1351 = vmatpush3.msra.mxu0 %v334_v43 }
  0x9c   : > { %1352 = vmatprep.subr.mxu0 %v1444_v0 }
  0x9d   : > { %v308_v44 = vpop.permute.xlu1 %307  ;;  %v284_v45 = vpop.permute.xlu0 %283 }
  0x9e   : > { %v335_v46 = vsel %vm321_vm1, %v284_v45, %v308_v44 }
  0x9f   : > { %1358 = vmatpush3.msra.mxu1 %v335_v46 }
  0xa0   : > { %1359 = vmatprep.subr.mxu1 %v1444_v0 }
  0xa1   : > { %v260_v47 = vpop.permute.xlu1 %259  ;;  %v258_v48 = vpop.permute.xlu0 %257 }
  0xa2   : > { %v327_v50 = vsel %vm321_vm1, %v1532_v11, %v260_v47  ;;  %v326_v51 = vsel %vm321_vm1, %v1526_v9, %v258_v48 }
  0xa3   : > { %1353 = vmatpush3.msra.mxu0 %v326_v51  ;;  %1360 = vmatpush3.msra.mxu1 %v327_v50 }
  0xa4   : > { %1355 = vmatmul.mubr.msk.f32.vlgmr.msra.gmra.mxu0 %vm347_vm2, %v342_v49  ;;  %1364 = vmatprep.subr.mxu0 %v1444_v0 }
  0xa5   : > { %v310_v53 = vpop.permute.xlu1 %309  ;;  %v286_v54 = vpop.permute.xlu0 %285  ;;  %1371 = vmatprep.subr.mxu1 %v1444_v0  ;;  %1362 = vmatmul.mubr.msk.f32.vlgmr.msra.gmra.mxu1 %vm347_vm2, %v343_v52 }
  0xa6   : > { %v336_v55 = vsel %vm321_vm1, %v286_v54, %v310_v53  ;;  %1368 = vmatprep.mubr.msk.f32.mxu0 %vm1445_vm0, %v1444_v0  ;;  %1375 = vmatprep.mubr.msk.f32.mxu1 %vm1445_vm0, %v1444_v0 }
  0xa7   : > { %1365 = vmatpush3.msra.mxu0 %v336_v55 }
  0xa8   : > { %1366 = vmatprep.subr.mxu0 %v1444_v0 }
  0xa9   : > { %v312_v56 = vpop.permute.xlu1 %311  ;;  %v288_v57 = vpop.permute.xlu0 %287 }
  0xaa   : > { %v337_v58 = vsel %vm321_vm1, %v288_v57, %v312_v56 }
  0xab   : > { %1372 = vmatpush3.msra.mxu1 %v337_v58 }
  0xac   : > { %1373 = vmatprep.subr.mxu1 %v1444_v0 }
  0xad   : > { %v262_v59 = vpop.permute.xlu0 %261  ;;  %v264_v61 = vpop.permute.xlu1 %263 }
  0xae   : > { %v328_v63 = vsel %vm321_vm1, %v1542_v13, %v262_v59  ;;  %v329_v1 = vsel %vm321_vm1, %v1548_v15, %v264_v61  ;;  %v1123_v59 = vld [vmem:[%s1723_s3 + $0x18] sm:$0x3f]  ;;  %v1121_v61 = vld [vmem:[%s1723_s3 + $0x8] sm:$0xff] }
  0xaf   : > { %1367 = vmatpush3.msra.mxu0 %v328_v63  ;;  %1374 = vmatpush3.msra.mxu1 %v329_v1 }
  0xb0   : > { %1369 = vmatmul.mubr.msk.f32.vlgmr.msra.gmra.mxu0 %vm347_vm2, %v344_v60  ;;  %1376 = vmatmul.mubr.msk.f32.vlgmr.msra.gmra.mxu1 %vm347_vm2, %v345_v62  ;;  %v1122_v60 = vld [vmem:[%s1723_s3 + $0x10] sm:$0xff] }
  0xb1   : > { %1378 = vmatprep.subr.mxu0 %v1444_v0  ;;  %1386 = vmatprep.mubr.msk.f32.mxu0 %vm1445_vm0, %v1444_v0 }
  0xb2   : > { %1379 = vmatpush3.msk.msra.mxu0 %vm1135_vm3, %v1123_v59 }
  0xb3   : > { %1380 = vmatprep.subr.mxu0 %v1444_v0 }
  0xb4   : > { %1381 = vmatpush3.msra.mxu0 %v1122_v60 }
  0xb5   : > { %1382 = vmatprep.subr.mxu0 %v1444_v0 }
  0xb6   : > { %1383 = vmatpush3.msra.mxu0 %v1121_v61 }
  0xb7   : > { %1384 = vmatprep.subr.mxu0 %v1444_v0 }
 0x14a   : > { %v417_v3 = vpop.f32.mrf.mxu1 }
 0x14b   : > { %v418_v4 = vadd.f32 %v417_v3, %v346_v2 }
 0x14c   : > { %v1328_v5 = vpop.f32.mrf.mxu1 }
 0x14d   : > { %v1280_v6 = vmul.f32 -1.442695, %v418_v4 }
 0x14e   : > { %v490_v7 = vpop.f32.mrf.mxu1 }
 0x14f   : > { %1404 = vpow2.f32 %v1280_v6  ;;  %v491_v9 = vadd.f32 %v490_v7, %v346_v2 }
 0x150   : > { %v1335_v8 = vpop.f32.mrf.mxu1 }
 0x151   : > { %v1281_v10 = vmul.f32 -1.442695, %v491_v9 }
 0x153   : > { %1406 = vpow2.f32 %v1281_v10 }
 0x158   : > { %v563_v11 = vpop.f32.mrf.mxu0 }
 0x159   : > { %v564_v12 = vadd.f32 %v563_v11, %v346_v2  ;;  %v636_v13 = vpop.f32.mrf.mxu1 }
 0x15a   : > { %v1342_v14 = vpop.f32.mrf.mxu0  ;;  %v637_v19 = vadd.f32 %v636_v13, %v346_v2 }
 0x15b   : > { %v1282_v15 = vmul.f32 -1.442695, %v564_v12  ;;  %v1349_v16 = vpop.f32.mrf.mxu1 }
 0x15c   : > { %v1405_v17 = vpop.eup %1404  ;;  %v1283_v25 = vmul.f32 -1.442695, %v637_v19 }
 0x15d   : > { %v956_v18 = vadd.f32 1.0, %v1405_v17  ;;  %1408 = vpow2.f32 %v1282_v15 }
 0x15f   : > { %1410 = vrcp.f32 %v956_v18 }
 0x160   : > { %v1407_v27 = vpop.eup %1406 }
 0x161   : > { %v957_v30 = vadd.f32 1.0, %v1407_v27 }
 0x164   : > { %v709_v20 = vpop.f32.mrf.mxu0 }
 0x165   : > { %v710_v21 = vadd.f32 %v709_v20, %v346_v2  ;;  %v782_v22 = vpop.f32.mrf.mxu1 }
 0x166   : > { %v1356_v23 = vpop.f32.mrf.mxu0  ;;  %v783_v31 = vadd.f32 %v782_v22, %v346_v2 }
 0x167   : > { %v1284_v24 = vmul.f32 -1.442695, %v710_v21  ;;  %v1363_v26 = vpop.f32.mrf.mxu1 }
 0x168   : > { %v1285_v33 = vmul.f32 -1.442695, %v783_v31 }
 0x169   : > { %1412 = vpow2.f32 %v1284_v24 }
 0x16a   : > { %v1409_v28 = vpop.eup %1408  ;;  %1414 = vpow2.f32 %v1283_v25 }
 0x16b   : > { %v958_v29 = vadd.f32 1.0, %v1409_v28 }
 0x16c   : > { %v1645_v32 = vpop.eup %1410 }
 0x16d   : > { %1416 = vrcp.f32 %v958_v29  ;;  %988 = vrot.lane.b32.xlu0 %v1645_v32, %s1447_s26 }
 0x16e   : > { %1418 = vrcp.f32 %v957_v30 }
 0x16f   : > { %1420 = vpow2.f32 %v1285_v33 }
 0x170   : > { %v855_v34 = vpop.f32.mrf.mxu0  ;;  %v928_v35 = vpop.f32.mrf.mxu1 }
 0x171   : > { %v856_v36 = vadd.f32 %v855_v34, %v346_v2  ;;  %v929_v37 = vadd.f32 %v928_v35, %v346_v2  ;;  %v1120_v34 = vld [vmem:[%s1723_s3] sm:$0xff] }
 0x172   : > { %v1370_v38 = vpop.f32.mrf.mxu0  ;;  %v1377_v39 = vpop.f32.mrf.mxu1  ;;  %1385 = vmatpush3.msra.mxu0 %v1120_v34 }
 0x173   : > { %v1286_v40 = vmul.f32 -1.442695, %v856_v36  ;;  %v1287_v41 = vmul.f32 -1.442695, %v929_v37 }
 0x175   : > { %1422 = vpow2.f32 %v1286_v40 }
 0x176   : > { %v1413_v42 = vpop.eup %1412  ;;  %1424 = vpow2.f32 %v1287_v41 }
 0x177   : > { %v960_v43 = vadd.f32 1.0, %v1413_v42  ;;  %v1415_v44 = vpop.eup %1414 }
 0x178   : > { %v959_v46 = vadd.f32 1.0, %v1415_v44 }
 0x179   : > { %1426 = vrcp.f32 %v960_v43 }
 0x17a   : > { %v1417_v45 = vpop.eup %1416  ;;  %1428 = vrcp.f32 %v959_v46 }
 0x17b   : > { %1024 = vrot.lane.b32.xlu1 %v1417_v45, %s1446_s25  ;;  %992 = vrot.lane.b32.xlu0 %v1417_v45, %s1447_s26  ;;  %v1419_v47 = vpop.eup %1418 }
 0x17c   : > { %v1421_v48 = vpop.eup %1420 }
 0x17d   : > { %v961_v51 = vadd.f32 1.0, %v1421_v48 }
 0x17f   : > { %990 = vrot.lane.b32.xlu1 %v1419_v47, %s1447_s26  ;;  %1020 = vrot.lane.b32.xlu0 %v1645_v32, %s1446_s25 }
 0x182   : > { %v1423_v49 = vpop.eup %1422 }
 0x183   : > { %v962_v50 = vadd.f32 1.0, %v1423_v49  ;;  %1022 = vrot.lane.b32.xlu0 %v1419_v47, %s1446_s25  ;;  %v1425_v52 = vpop.eup %1424 }
 0x184   : > { %v963_v54 = vadd.f32 1.0, %v1425_v52 }
 0x185   : > { %1430 = vrcp.f32 %v962_v50 }
 0x186   : > { %v1427_v53 = vpop.eup %1426  ;;  %1432 = vrcp.f32 %v961_v51 }
 0x187   : > { %996 = vrot.lane.b32.xlu1 %v1427_v53, %s1447_s26  ;;  %1434 = vrcp.f32 %v963_v54  ;;  %v1429_v55 = vpop.eup %1428 }
 0x18b   : > { %1028 = vrot.lane.b32.xlu1 %v1427_v53, %s1446_s25 }
 0x18f   : > { %994 = vrot.lane.b32.xlu1 %v1429_v55, %s1447_s26 }
 0x192   : > { %v1658_v56 = vpop.eup %1430 }
 0x193   : > { %1026 = vrot.lane.b32.xlu1 %v1429_v55, %s1446_s25  ;;  %1000 = vrot.lane.b32.xlu0 %v1658_v56, %s1447_s26  ;;  %v1433_v57 = vpop.eup %1432 }
 0x194   : > { %v1665_v58 = vpop.eup %1434 }
 0x197   : > { %998 = vrot.lane.b32.xlu0 %v1433_v57, %s1447_s26  ;;  %1030 = vrot.lane.b32.xlu1 %v1433_v57, %s1446_s25 }
 0x19b   : > { %1002 = vrot.lane.b32.xlu0 %v1665_v58, %s1447_s26  ;;  %1034 = vrot.lane.b32.xlu1 %v1665_v58, %s1446_s25 }
 0x19f   : > { %1032 = vrot.lane.b32.xlu0 %v1658_v56, %s1446_s25 }
 0x1df   : > { %v989_v62 = vpop.permute.xlu0 %988 }
 0x1e0   : > { %v1012_v8 = vmax.f32 %v1645_v32, %v989_v62 }
 0x1ed   : > { %v1025_v63 = vpop.permute.xlu1 %1024  ;;  %v993_v1 = vpop.permute.xlu0 %992 }
 0x1ee   : > { %v1014_v2 = vmax.f32 %v1417_v45, %v993_v1 }
 0x1f0   : > { %v1046_v6 = vmax.f32 %v1014_v2, %v1025_v63 }
 0x1f1   : > { %v991_v3 = vpop.permute.xlu1 %990  ;;  %v1021_v4 = vpop.permute.xlu0 %1020 }
 0x1f2   : > { %v1013_v5 = vmax.f32 %v1419_v47, %v991_v3  ;;  %v1044_v10 = vmax.f32 %v1012_v8, %v1021_v4  ;;  %v1063_v12 = vrot.slane %v1046_v6, 6  ;;  %v1084_v39 = vrot.slane %v1046_v6, 7 }
 0x1f4   : > { %v1082_v25 = vrot.slane %v1044_v10, 1  ;;  %v1099_v28 = vrot.slane %v1044_v10, 2 }
 0x1f5   : > { %v1023_v7 = vpop.permute.xlu0 %1022 }
 0x1f6   : > { %v1045_v9 = vmax.f32 %v1013_v5, %v1023_v7 }
 0x1f8   : > { %v1060_v11 = vrot.slane %v1045_v9, 7  ;;  %v1100_v23 = vrot.slane %v1045_v9, 1  ;;  %v1083_v32 = vsel %vm1061_vm4, %v1045_v9, %v1082_v25 }
 0x1f9   : > { %v997_v13 = vpop.permute.xlu1 %996  ;;  %v1085_v43 = vsel %vm1064_vm5, %v1084_v39, %v1083_v32 }
 0x1fa   : > { %v1062_v0 = vsel %vm1061_vm4, %v1060_v11, %v1044_v10  ;;  %v1016_v17 = vmax.f32 %v1427_v53, %v997_v13  ;;  %v1101_v35 = vsel %vm1061_vm4, %v1100_v23, %v1099_v28 }
 0x1fb   : > { %v1065_v14 = vsel %vm1064_vm5, %v1063_v12, %v1062_v0  ;;  %v1102_v44 = vsel %vm1064_vm5, %v1046_v6, %v1101_v35  ;;  %v1288_v0 = vld [vmem:[%s1724_s4] ss:$0 sm:$0xff] }
 0x1fd   : > { %v1029_v15 = vpop.permute.xlu1 %1028 }
 0x1fe   : > { %v1048_v19 = vmax.f32 %v1016_v17, %v1029_v15 }
 0x200   : > { %v1069_v26 = vrot.slane %v1048_v19, 4  ;;  %v1088_v51 = vrot.slane %v1048_v19, 5  ;;  %v1105_v52 = vrot.slane %v1048_v19, 6 }
 0x201   : > { %v995_v16 = vpop.permute.xlu1 %994 }
 0x202   : > { %v1015_v18 = vmax.f32 %v1429_v55, %v995_v16 }
 0x205   : > { %v1027_v20 = vpop.permute.xlu1 %1026  ;;  %v1001_v21 = vpop.permute.xlu0 %1000 }
 0x206   : > { %v1047_v22 = vmax.f32 %v1015_v18, %v1027_v20  ;;  %v1018_v45 = vmax.f32 %v1658_v56, %v1001_v21 }
 0x208   : > { %v1066_v24 = vrot.slane %v1047_v22, 5  ;;  %v1086_v36 = vrot.slane %v1047_v22, 6  ;;  %v1103_v37 = vrot.slane %v1047_v22, 7 }
 0x209   : > { %v999_v27 = vpop.permute.xlu0 %998  ;;  %v1031_v31 = vpop.permute.xlu1 %1030 }
 0x20a   : > { %v1068_v29 = vsel %vm1067_vm6, %v1066_v24, %v1065_v14  ;;  %v1017_v30 = vmax.f32 %v1433_v57, %v999_v27  ;;  %v1087_v46 = vsel %vm1067_vm6, %v1086_v36, %v1085_v43  ;;  %v1104_v47 = vsel %vm1067_vm6, %v1103_v37, %v1102_v44 }
 0x20b   : > { %v1071_v33 = vsel %vm1070_vm7, %v1069_v26, %v1068_v29  ;;  %v1089_v56 = vsel %vm1070_vm7, %v1088_v51, %v1087_v46 }
 0x20c   : > { %v1049_v38 = vmax.f32 %v1017_v30, %v1031_v31 }
 0x20d   : > { %v1003_v40 = vpop.permute.xlu0 %1002  ;;  %v1035_v49 = vpop.permute.xlu1 %1034 }
 0x20e   : > { %v1072_v41 = vrot.slane %v1049_v38, 3  ;;  %v1019_v42 = vmax.f32 %v1665_v58, %v1003_v40  ;;  %v1107_v48 = vrot.slane %v1049_v38, 5  ;;  %v1090_v53 = vrot.slane %v1049_v38, 4 }
 0x20f   : > { %v1106_v58 = vsel %vm1070_vm7, %v1105_v52, %v1104_v47 }
 0x210   : > { %v1074_v50 = vsel %vm1073_vm8, %v1072_v41, %v1071_v33  ;;  %v1051_v54 = vmax.f32 %v1019_v42, %v1035_v49  ;;  %v1108_v62 = vsel %vm1073_vm8, %v1107_v48, %v1106_v58  ;;  %v1091_v3 = vsel %vm1073_vm8, %v1090_v53, %v1089_v56 }
 0x211   : > { %v1033_v55 = vpop.permute.xlu0 %1032 }
 0x212   : > { %v1050_v57 = vmax.f32 %v1018_v45, %v1033_v55  ;;  %v1078_v63 = vrot.slane %v1051_v54, 1  ;;  %v1094_v1 = vrot.slane %v1051_v54, 2  ;;  %v1111_v2 = vrot.slane %v1051_v54, 3 }
 0x214   : > { %v1075_v59 = vrot.slane %v1050_v57, 2  ;;  %v1092_v60 = vrot.slane %v1050_v57, 3  ;;  %v1109_v61 = vrot.slane %v1050_v57, 4 }
 0x216   : > { %v1110_v4 = vsel %vm1076_vm9, %v1109_v61, %v1108_v62  ;;  %v1093_v5 = vsel %vm1076_vm9, %v1092_v60, %v1091_v3  ;;  %v1077_v6 = vsel %vm1076_vm9, %v1075_v59, %v1074_v50 }
 0x217   : > { %v1112_v7 = vsel %vm1079_vm10, %v1111_v2, %v1110_v4  ;;  %v1095_v8 = vsel %vm1079_vm10, %v1094_v1, %v1093_v5  ;;  %v1080_v9 = vsel %vm1079_vm10, %v1078_v63, %v1077_v6 }
 0x218   : > { %1113 = vrot.lane.b32.xlu1 %v1112_v7, %s1449_s6  ;;  %1096 = vrot.lane.b32.xlu0 %v1095_v8, %s1450_s7 }
 0x28a   : > { %v1114_v10 = vpop.permute.xlu1 %1113  ;;  %v1097_v11 = vpop.permute.xlu0 %1096 }
 0x28b   : > { %v1117_v12 = vsel %vm1116_vm11, %v1080_v9, %v1097_v11 }
 0x28c   : > { %v1119_v13 = vsel %vm1118_vm12, %v1117_v12, %v1114_v10 }
 0x28d   : > { %1387 = vmatmul.mubr.msk.f32.vlgmr.msra.gmra.mxu0 %vm1131_vm13, %v1119_v13 }
 0x34d   : > { %v1205_v14 = vpop.f32.mrf.mxu0 }
 0x34e   : > { %v1206_v15 = vadd.f32 %v1288_v0, %v1205_v14 }
 0x34f   : > { %v1388_v16 = vpop.f32.mrf.mxu0 }
 0x350   : > { %1210 = vst.msk [vmem:[%s224_s13] sm:$0xff] %vm1209_vm14, %v1206_v15 }
 0x351 PF: > { %s15_s18 = sadd.s32 1, %s1442_s18  }
 0x352   : > { %p12_p5 = scmp.ge.s32.totalorder %s15_s18, 4  }
 0x354   :  { %14 = sbr.rel (!%p12_p5) target bundleno = 1 (0x1), region = 70 }

</bundles_post_ra>
